<compile_context>
chip_gen: v5e
topology: v5e:2x2
jax: 0.10.0
libtpu: 0.0.40
codegen_flags: <defaults>
</compile_context>

<pallas_src>
import functools

import jax
import jax.numpy as jnp
from jax.experimental import pallas as pl
from jax.experimental.pallas import tpu as pltpu


# ----------------------------------------------------------------------------
# tiling helpers
# ----------------------------------------------------------------------------

def _round_up(x, m):
    return ((x + m - 1) // m) * m


def _tile_and_pad(n, max_tile, gran):
    """(tile, padded_n).  If n fits in one tile use the full (unpadded) dim; otherwise keep
    the tile as large as possible (multiple of `gran`) and pad n to a multiple of it,
    backing off only when padding waste would exceed ~12.5%."""
    if n <= max_tile:
        return n, n
    t = max_tile
    while t > gran and (_round_up(n, t) - n) * 8 > n:
        t -= gran
    return t, _round_up(n, t)


def _choose_divisor_tile(n, max_tile, gran):
    """Largest tile <= max_tile that is a multiple of `gran` and divides n (else n)."""
    t = min(max_tile, n)
    t -= t % gran
    while t >= gran:
        if n % t == 0:
            return t
        t -= gran
    return n


def _reduction_tile(k, max_tile):
    """Largest multiple-of-128 divisor of k that is <= max_tile, else k (full dim)."""
    best = None
    t = 128
    while t <= min(max_tile, k):
        if k % t == 0:
            best = t
        t += 128
    return best if best is not None else k


# ----------------------------------------------------------------------------
# LayerNorm row-stats (the affine normalization is fused into the consuming matmul)
# ----------------------------------------------------------------------------

def _ln_stats_kernel(x_ref, mu_ref, rs_ref, *, eps):
    x = x_ref[...].astype(jnp.float32)
    mu = jnp.mean(x, axis=-1, keepdims=True)
    var = jnp.mean(jnp.square(x - mu), axis=-1, keepdims=True)
    mu_ref[...] = mu
    rs_ref[...] = jax.lax.rsqrt(var + eps)


def layer_norm_stats(x, eps=1e-5):
    """x:(M,C) -> (mean, rstd) each (M,1) float32."""
    M, C = x.shape
    tm = _choose_divisor_tile(M, 512, 8)
    return pl.pallas_call(
        functools.partial(_ln_stats_kernel, eps=eps),
        out_shape=(jax.ShapeDtypeStruct((M, 1), jnp.float32),
                   jax.ShapeDtypeStruct((M, 1), jnp.float32)),
        grid=(M // tm,),
        in_specs=[pl.BlockSpec((tm, C), lambda i: (i, 0))],
        out_specs=(pl.BlockSpec((tm, 1), lambda i: (i, 0)),
                   pl.BlockSpec((tm, 1), lambda i: (i, 0))),
        compiler_params=pltpu.CompilerParams(dimension_semantics=("parallel",)),
    )(x)


def _apply_ln(x, mu_ref, rs_ref, g_ref, b_ref):
    xf = x.astype(jnp.float32)
    xn = (xf - mu_ref[...]) * rs_ref[...] * g_ref[...] + b_ref[...]
    return xn.astype(jnp.bfloat16)


def _pad_ln(ln, Mp, Kp):
    mu, rs, g, b = ln
    mu = mu.astype(jnp.float32)
    rs = rs.astype(jnp.float32)
    if Mp != mu.shape[0]:
        mu = jnp.pad(mu, ((0, Mp - mu.shape[0]), (0, 0)))
        rs = jnp.pad(rs, ((0, Mp - rs.shape[0]), (0, 0)))
    g = g.astype(jnp.float32).reshape(1, -1)
    b = b.astype(jnp.float32).reshape(1, -1)
    if Kp != g.shape[1]:
        g = jnp.pad(g, ((0, 0), (0, Kp - g.shape[1])))
        b = jnp.pad(b, ((0, 0), (0, Kp - b.shape[1])))
    return mu, rs, g, b


def _ln_specs(tm, tk):
    return [pl.BlockSpec((tm, 1), lambda i, j, k: (i, 0)),
            pl.BlockSpec((tm, 1), lambda i, j, k: (i, 0)),
            pl.BlockSpec((1, tk), lambda i, j, k: (0, k)),
            pl.BlockSpec((1, tk), lambda i, j, k: (0, k))]


# ----------------------------------------------------------------------------
# tiled matmul (+ optional fused LayerNorm or SiLU on the input)
# ----------------------------------------------------------------------------

def _matmul_kernel(*refs, act_in, has_ln):
    if has_ln:
        x_ref, mu_ref, rs_ref, g_ref, bt_ref, w_ref, b_ref, o_ref, acc_ref = refs
    else:
        x_ref, w_ref, b_ref, o_ref, acc_ref = refs
    k = pl.program_id(2)

    @pl.when(k == 0)
    def _():
        acc_ref[...] = jnp.zeros_like(acc_ref)

    x = x_ref[...]
    if has_ln:
        x = _apply_ln(x, mu_ref, rs_ref, g_ref, bt_ref)
    elif act_in == "silu":
        xf = x.astype(jnp.float32)
        x = (xf * jax.nn.sigmoid(xf)).astype(jnp.bfloat16)
    else:
        x = x.astype(jnp.bfloat16)
    acc_ref[...] += jnp.dot(x, w_ref[...], preferred_element_type=jnp.float32)

    @pl.when(k == pl.num_programs(2) - 1)
    def _():
        o_ref[...] = (acc_ref[...] + b_ref[...]).astype(o_ref.dtype)


def matmul(x, w, b=None, act_in=None, ln=None, out_dtype=jnp.bfloat16,
           max_tm=512, max_tn=256, max_tk=512):
    """Tiled y = act(ln(x)) @ w + b.  x:(M,K), w:(K,N), b:(N,)|None.
    ln=(mean, rstd, gamma, beta) applies LayerNorm to x on the fly (saves an HBM pass)."""
    assert not (act_in is not None and ln is not None)
    M, K = x.shape
    N = w.shape[1]
    tm, Mp = _tile_and_pad(M, max_tm, 16)
    tn, Np = _tile_and_pad(N, max_tn, 128)
    tk, Kp = _tile_and_pad(K, max_tk, 128)
    xp = x.astype(jnp.bfloat16)
    if (Mp, Kp) != (M, K):
        xp = jnp.pad(xp, ((0, Mp - M), (0, Kp - K)))
    wp = w.astype(jnp.bfloat16)
    if (Kp, Np) != (K, N):
        wp = jnp.pad(wp, ((0, Kp - K), (0, Np - N)))
    bb = jnp.zeros((N,), jnp.float32) if b is None else b.astype(jnp.float32)
    if Np != N:
        bb = jnp.pad(bb, (0, Np - N))
    has_ln = ln is not None
    inputs = [xp]
    in_specs = [pl.BlockSpec((tm, tk), lambda i, j, k: (i, k))]
    if has_ln:
        inputs += list(_pad_ln(ln, Mp, Kp))
        in_specs += _ln_specs(tm, tk)
    inputs += [wp, bb.reshape(1, Np)]
    in_specs += [pl.BlockSpec((tk, tn), lambda i, j, k: (k, j)),
                 pl.BlockSpec((1, tn), lambda i, j, k: (0, j))]
    out = pl.pallas_call(
        functools.partial(_matmul_kernel, act_in=act_in, has_ln=has_ln),
        out_shape=jax.ShapeDtypeStruct((Mp, Np), out_dtype),
        grid=(Mp // tm, Np // tn, Kp // tk),
        in_specs=in_specs,
        out_specs=pl.BlockSpec((tm, tn), lambda i, j, k: (i, j)),
        scratch_shapes=[pltpu.VMEM((tm, tn), jnp.float32)],
        compiler_params=pltpu.CompilerParams(
            dimension_semantics=("parallel", "parallel", "arbitrary")),
    )(*inputs)
    if (Mp, Np) != (M, N):
        out = out[:M, :N]
    return out


# ----------------------------------------------------------------------------
# multi-output matmul: one shared input, n_out weight stacks, n_out separate outputs
# (used for the fused Q/K/V + KV-copy projections — no wrapper-side slab slicing)
# ----------------------------------------------------------------------------

def _matmul_multi_kernel(*refs, n_out, has_ln):
    if has_ln:
        x_ref, mu_ref, rs_ref, g_ref, bt_ref, w_ref = refs[:6]
        rest = refs[6:]
    else:
        x_ref, w_ref = refs[:2]
        rest = refs[2:]
    o_refs = rest[:n_out]
    acc_refs = rest[n_out:]
    k = pl.program_id(2)

    @pl.when(k == 0)
    def _():
        for a in acc_refs:
            a[...] = jnp.zeros_like(a)

    x = x_ref[...]
    if has_ln:
        x = _apply_ln(x, mu_ref, rs_ref, g_ref, bt_ref)
    else:
        x = x.astype(jnp.bfloat16)
    for n in range(n_out):
        acc_refs[n][...] += jnp.dot(x, w_ref[n], preferred_element_type=jnp.float32)

    @pl.when(k == pl.num_programs(2) - 1)
    def _():
        for n in range(n_out):
            o_refs[n][...] = acc_refs[n][...].astype(o_refs[n].dtype)


def matmul_multi(x, ws, out_dtypes, ln=None, max_tm=512, max_tn=256, max_tk=512):
    """y_n = ln(x) @ ws[n] (no bias) for every n, as separate pallas_call outputs."""
    M, K = x.shape
    N = ws[0].shape[1]
    n_out = len(ws)
    tm, Mp = _tile_and_pad(M, max_tm, 16)
    tn, Np = _tile_and_pad(N, max_tn, 128)
    tk, Kp = _tile_and_pad(K, max_tk, 128)
    xp = x.astype(jnp.bfloat16)
    if (Mp, Kp) != (M, K):
        xp = jnp.pad(xp, ((0, Mp - M), (0, Kp - K)))
    wst = jnp.stack([w.astype(jnp.bfloat16) for w in ws])
    if (Kp, Np) != (K, N):
        wst = jnp.pad(wst, ((0, 0), (0, Kp - K), (0, Np - N)))
    has_ln = ln is not None
    inputs = [xp]
    in_specs = [pl.BlockSpec((tm, tk), lambda i, j, k: (i, k))]
    if has_ln:
        inputs += list(_pad_ln(ln, Mp, Kp))
        in_specs += _ln_specs(tm, tk)
    inputs.append(wst)
    in_specs.append(pl.BlockSpec((n_out, tk, tn), lambda i, j, k: (0, k, j)))
    outs = pl.pallas_call(
        functools.partial(_matmul_multi_kernel, n_out=n_out, has_ln=has_ln),
        out_shape=tuple(jax.ShapeDtypeStruct((Mp, Np), dt) for dt in out_dtypes),
        grid=(Mp // tm, Np // tn, Kp // tk),
        in_specs=in_specs,
        out_specs=tuple(pl.BlockSpec((tm, tn), lambda i, j, k: (i, j))
                        for _ in range(n_out)),
        scratch_shapes=[pltpu.VMEM((tm, tn), jnp.float32) for _ in range(n_out)],
        compiler_params=pltpu.CompilerParams(
            dimension_semantics=("parallel", "parallel", "arbitrary")),
    )(*inputs)
    if (Mp, Np) != (M, N):
        outs = tuple(o[:M, :N] for o in outs)
    return list(outs)


# ----------------------------------------------------------------------------
# GEGLU (fused projection + gated GELU, optional fused LayerNorm on the input)
# ----------------------------------------------------------------------------

def _geglu_kernel(*refs, has_ln):
    if has_ln:
        (x_ref, mu_ref, rs_ref, g_ref, bt_ref,
         w1_ref, w2_ref, b1_ref, b2_ref, o_ref, acc1, acc2) = refs
    else:
        x_ref, w1_ref, w2_ref, b1_ref, b2_ref, o_ref, acc1, acc2 = refs
    k = pl.program_id(2)

    @pl.when(k == 0)
    def _():
        acc1[...] = jnp.zeros_like(acc1)
        acc2[...] = jnp.zeros_like(acc2)

    x = x_ref[...]
    if has_ln:
        x = _apply_ln(x, mu_ref, rs_ref, g_ref, bt_ref)
    else:
        x = x.astype(jnp.bfloat16)
    acc1[...] += jnp.dot(x, w1_ref[...], preferred_element_type=jnp.float32)
    acc2[...] += jnp.dot(x, w2_ref[...], preferred_element_type=jnp.float32)

    @pl.when(k == pl.num_programs(2) - 1)
    def _():
        h = acc1[...] + b1_ref[...]
        gate = acc2[...] + b2_ref[...]
        # TODO(synk): torch F.gelu defaults to the exact erf form; tanh approximation kept
        #             here to guarantee Mosaic elementwise lowering.
        o_ref[...] = (h * jax.nn.gelu(gate, approximate=True)).astype(o_ref.dtype)


def geglu(x, w, b, ln=None, out_dtype=jnp.bfloat16, max_tm=512, max_tn=256, max_tk=512):
    """x:(M,K), w:(K,2*dff), b:(2*dff,) -> x1 * gelu(x2), shape (M,dff)."""
    M, K = x.shape
    dff = w.shape[1] // 2
    tm, Mp = _tile_and_pad(M, max_tm, 16)
    tn, Np = _tile_and_pad(dff, max_tn, 128)
    tk, Kp = _tile_and_pad(K, max_tk, 128)
    xp = x.astype(jnp.bfloat16)
    if (Mp, Kp) != (M, K):
        xp = jnp.pad(xp, ((0, Mp - M), (0, Kp - K)))

    def prep_w(wi):
        wi = wi.astype(jnp.bfloat16)
        if (Kp, Np) != (K, dff):
            wi = jnp.pad(wi, ((0, Kp - K), (0, Np - dff)))
        return wi

    def prep_b(bi):
        bi = bi.astype(jnp.float32)
        if Np != dff:
            bi = jnp.pad(bi, (0, Np - dff))
        return bi.reshape(1, Np)

    has_ln = ln is not None
    inputs = [xp]
    in_specs = [pl.BlockSpec((tm, tk), lambda i, j, k: (i, k))]
    if has_ln:
        inputs += list(_pad_ln(ln, Mp, Kp))
        in_specs += _ln_specs(tm, tk)
    inputs += [prep_w(w[:, :dff]), prep_w(w[:, dff:]), prep_b(b[:dff]), prep_b(b[dff:])]
    in_specs += [pl.BlockSpec((tk, tn), lambda i, j, k: (k, j)),
                 pl.BlockSpec((tk, tn), lambda i, j, k: (k, j)),
                 pl.BlockSpec((1, tn), lambda i, j, k: (0, j)),
                 pl.BlockSpec((1, tn), lambda i, j, k: (0, j))]
    out = pl.pallas_call(
        functools.partial(_geglu_kernel, has_ln=has_ln),
        out_shape=jax.ShapeDtypeStruct((Mp, Np), out_dtype),
        grid=(Mp // tm, Np // tn, Kp // tk),
        in_specs=in_specs,
        out_specs=pl.BlockSpec((tm, tn), lambda i, j, k: (i, j)),
        scratch_shapes=[pltpu.VMEM((tm, tn), jnp.float32),
                        pltpu.VMEM((tm, tn), jnp.float32)],
        compiler_params=pltpu.CompilerParams(
            dimension_semantics=("parallel", "parallel", "arbitrary")),
    )(*inputs)
    if (Mp, Np) != (M, dff):
        out = out[:M, :dff]
    return out


# ----------------------------------------------------------------------------
# GroupNorm (+ optional fused SiLU): two-pass, tiled over HW, channels-last
# ----------------------------------------------------------------------------

def _gn_stats_kernel(x_ref, m_ref, mt_ref, g_ref, b_ref, o_ref, s_acc, q_acc, *, eps, inv_n):
    t = pl.program_id(1)

    @pl.when(t == 0)
    def _():
        s_acc[...] = jnp.zeros_like(s_acc)
        q_acc[...] = jnp.zeros_like(q_acc)

    x = x_ref[...].astype(jnp.float32)                       # (thw, C)
    s_acc[...] += jnp.sum(x, axis=0, keepdims=True)
    q_acc[...] += jnp.sum(x * x, axis=0, keepdims=True)

    @pl.when(t == pl.num_programs(1) - 1)
    def _():
        # per-group stats via a (C, G) membership matmul (negligible FLOPs, C stays on lanes)
        s_g = jnp.dot(s_acc[...], m_ref[...], preferred_element_type=jnp.float32)
        q_g = jnp.dot(q_acc[...], m_ref[...], preferred_element_type=jnp.float32)
        mean_g = s_g * inv_n
        var_g = jnp.maximum(q_g * inv_n - mean_g * mean_g, 0.0)   # E[x^2]-E[x]^2 >= 0
        rstd_g = jax.lax.rsqrt(var_g + eps)
        mean_c = jnp.dot(mean_g, mt_ref[...], preferred_element_type=jnp.float32)
        rstd_c = jnp.dot(rstd_g, mt_ref[...], preferred_element_type=jnp.float32)
        scale = g_ref[...] * rstd_c
        shift = b_ref[...] - mean_c * scale
        o_ref[...] = jnp.concatenate([scale, shift], axis=0)   # (2, C)


def _gn_apply_kernel(x_ref, ss_ref, o_ref, *, silu):
    x = x_ref[...].astype(jnp.float32)
    y = x * ss_ref[0:1, :] + ss_ref[1:2, :]
    if silu:
        y = y * jax.nn.sigmoid(y)
    o_ref[...] = y.astype(o_ref.dtype)


def group_norm(x, g, b, groups=32, eps=1e-5, silu=False, out_dtype=jnp.bfloat16):
    """x:(B,HW,C) channels-last GroupNorm.  Pass 1 streams HW tiles accumulating per-channel
    sums (scratch), emitting per-channel scale/shift; pass 2 normalizes (+SiLU) in parallel."""
    B, HW, C = x.shape
    cg = C // groups
    member = (jnp.arange(C)[:, None] // cg == jnp.arange(groups)[None, :]).astype(jnp.float32)
    inv_n = 1.0 / float(HW * cg)
    thw = _choose_divisor_tile(HW, 512, 8)
    n_t = HW // thw
    ss = pl.pallas_call(
        functools.partial(_gn_stats_kernel, eps=eps, inv_n=inv_n),
        out_shape=jax.ShapeDtypeStruct((B, 2, C), jnp.float32),
        grid=(B, n_t),
        in_specs=[pl.BlockSpec((None, thw, C), lambda bb, t: (bb, t, 0)),
                  pl.BlockSpec((C, groups), lambda bb, t: (0, 0)),
                  pl.BlockSpec((groups, C), lambda bb, t: (0, 0)),
                  pl.BlockSpec((1, C), lambda bb, t: (0, 0)),
                  pl.BlockSpec((1, C), lambda bb, t: (0, 0))],
        out_specs=pl.BlockSpec((None, 2, C), lambda bb, t: (bb, 0, 0)),
        scratch_shapes=[pltpu.VMEM((1, C), jnp.float32),
                        pltpu.VMEM((1, C), jnp.float32)],
        compiler_params=pltpu.CompilerParams(
            dimension_semantics=("parallel", "arbitrary")),
    )(x, member, member.T, g.reshape(1, C).astype(jnp.float32),
      b.reshape(1, C).astype(jnp.float32))
    out = pl.pallas_call(
        functools.partial(_gn_apply_kernel, silu=silu),
        out_shape=jax.ShapeDtypeStruct((B, HW, C), out_dtype),
        grid=(B, n_t),
        in_specs=[pl.BlockSpec((None, thw, C), lambda bb, t: (bb, t, 0)),
                  pl.BlockSpec((None, 2, C), lambda bb, t: (bb, 0, 0))],
        out_specs=pl.BlockSpec((None, thw, C), lambda bb, t: (bb, t, 0)),
        compiler_params=pltpu.CompilerParams(
            dimension_semantics=("parallel", "parallel")),
    )(x, ss)
    return out


# ----------------------------------------------------------------------------
# 3x3 'same' convolution as a tiled matmul: dx folded into channels (wrapper), dy on the
# reduction grid axis, f32 accumulator in VMEM scratch.
# ----------------------------------------------------------------------------

def _conv3x3_kernel(x_ref, w_ref, b_ref, pb_ref, o_ref, acc_ref):
    k = pl.program_id(3)

    @pl.when(k == 0)
    def _():
        acc_ref[...] = jnp.zeros_like(acc_ref)

    acc_ref[...] += jnp.dot(x_ref[...], w_ref[...], preferred_element_type=jnp.float32)

    @pl.when(k == pl.num_programs(3) - 1)
    def _():
        o_ref[...] = (acc_ref[...] + b_ref[...] + pb_ref[...]).astype(o_ref.dtype)


def conv3x3(x, w, b, per_batch_bias=None, out_dtype=jnp.bfloat16, max_tn=256, max_tck=768):
    """3x3 'same' conv.  x:(B,H,W,Cin) NHWC; w:(3,3,Cin,Cout) HWIO; b:(Cout,).
    per_batch_bias (B,Cout) is fused into the epilogue (resnet time-embedding add)."""
    B, H, W, Cin = x.shape
    Cout = w.shape[-1]
    K3 = 3 * Cin
    # fold the 3 dx taps into channels (one HBM pass, all later DMAs block-aligned)
    xpw = jnp.pad(x.astype(jnp.bfloat16), ((0, 0), (1, 1), (1, 1), (0, 0)))
    xw = jnp.concatenate([xpw[:, :, dx:dx + W, :] for dx in range(3)], axis=-1)  # (B,H+2,W,3Cin)
    # weight rows ordered dy-major then (dx, cin): row = dy*3Cin + dx*Cin + ci
    wk = w.astype(jnp.bfloat16).reshape(3, K3, Cout).reshape(3 * K3, Cout)
    bias = jnp.zeros((Cout,), jnp.float32) if b is None else b.astype(jnp.float32)
    pbb = (jnp.zeros((B, Cout), jnp.float32) if per_batch_bias is None
           else per_batch_bias.astype(jnp.float32))
    tck = _reduction_tile(K3, max_tck)
    nck = K3 // tck
    if Cout <= max_tn:
        tn, Coutp = Cout, Cout
    else:
        tn = max_tn
        Coutp = _round_up(Cout, tn)
        wk = jnp.pad(wk, ((0, 0), (0, Coutp - Cout)))
        bias = jnp.pad(bias, (0, Coutp - Cout))
        pbb = jnp.pad(pbb, ((0, 0), (0, Coutp - Cout)))
    out = pl.pallas_call(
        _conv3x3_kernel,
        out_shape=jax.ShapeDtypeStruct((B, H, W, Coutp), out_dtype),
        grid=(B, H, Coutp // tn, 3 * nck),
        in_specs=[pl.BlockSpec((None, None, W, tck),
                               lambda bb, i, j, k: (bb, i + k // nck, 0, k % nck)),
                  pl.BlockSpec((tck, tn), lambda bb, i, j, k: (k, j)),
                  pl.BlockSpec((1, tn), lambda bb, i, j, k: (0, j)),
                  pl.BlockSpec((None, 1, tn), lambda bb, i, j, k: (bb, 0, j))],
        out_specs=pl.BlockSpec((None, None, W, tn), lambda bb, i, j, k: (bb, i, 0, j)),
        scratch_shapes=[pltpu.VMEM((W, tn), jnp.float32)],
        compiler_params=pltpu.CompilerParams(
            dimension_semantics=("parallel", "parallel", "parallel", "arbitrary")),
    )(xw, wk, bias.reshape(1, Coutp), pbb.reshape(B, 1, Coutp))
    if Coutp != Cout:
        out = out[..., :Cout]
    return out


# ----------------------------------------------------------------------------
# flash-style attention: heads selected via the index_map (no HBM transposes), heads packed
# per grid step for lane-dense output stores, online softmax over kv tiles.
# ----------------------------------------------------------------------------

def _flash_attn_kernel(q_ref, k_ref, v_ref, o_ref, m_sc, l_sc, acc_sc, *, scale, hp, d):
    ki = pl.program_id(3)

    @pl.when(ki == 0)
    def _():
        m_sc[...] = jnp.full(m_sc.shape, -jnp.inf, jnp.float32)
        l_sc[...] = jnp.zeros_like(l_sc)
        acc_sc[...] = jnp.zeros_like(acc_sc)

    q = q_ref[...]                                  # (tq, hp*d) bf16
    k = k_ref[...]                                  # (tk, hp*d)
    v = v_ref[...]
    for h in range(hp):
        qh = q[:, h * d:(h + 1) * d]
        kh = k[:, h * d:(h + 1) * d]
        vh = v[:, h * d:(h + 1) * d]
        s = jax.lax.dot_general(qh, kh, (((1,), (1,)), ((), ())),
                                preferred_element_type=jnp.float32) * scale
        m_prev = m_sc[h]
        m_new = jnp.maximum(m_prev, jnp.max(s, axis=-1, keepdims=True))
        alpha = jnp.exp(m_prev - m_new)
        p = jnp.exp(s - m_new)
        l_sc[h] = alpha * l_sc[h] + jnp.sum(p, axis=-1, keepdims=True)
        acc_sc[h] = alpha * acc_sc[h] + jnp.dot(p.astype(jnp.bfloat16), vh,
                                                preferred_element_type=jnp.float32)
        m_sc[h] = m_new

    @pl.when(ki == pl.num_programs(3) - 1)
    def _():
        outs = [acc_sc[h] / l_sc[h] for h in range(hp)]   # exact divide (parity w/ torch)
        o = outs[0] if hp == 1 else jnp.concatenate(outs, axis=-1)
        o_ref[...] = o.astype(o_ref.dtype)


def multi_head_attention(q, k, v, num_heads, scale, out_dtype=jnp.bfloat16):
    """q:(B,Tq,C), k/v:(B,Tk,C) -> (B,Tq,C)."""
    B, Tq, C = q.shape
    Tk = k.shape[1]
    d = C // num_heads
    hp = 1
    while hp * 2 <= num_heads and hp * d < 128 and num_heads % (hp * 2) == 0:
        hp *= 2
    if (hp * d) % 128 != 0 and hp * d != C:
        hp = num_heads                               # fall back to the full channel slab
    dh = hp * d
    n_hb = num_heads // hp
    tq = _choose_divisor_tile(Tq, 256, 16)
    tk = _choose_divisor_tile(Tk, 256, 16)
    return pl.pallas_call(
        functools.partial(_flash_attn_kernel, scale=scale, hp=hp, d=d),
        out_shape=jax.ShapeDtypeStruct((B, Tq, C), out_dtype),
        grid=(B, n_hb, Tq // tq, Tk // tk),
        in_specs=[pl.BlockSpec((None, tq, dh), lambda b, h, qi, ki: (b, qi, h)),
                  pl.BlockSpec((None, tk, dh), lambda b, h, qi, ki: (b, ki, h)),
                  pl.BlockSpec((None, tk, dh), lambda b, h, qi, ki: (b, ki, h))],
        out_specs=pl.BlockSpec((None, tq, dh), lambda b, h, qi, ki: (b, qi, h)),
        scratch_shapes=[pltpu.VMEM((hp, tq, 1), jnp.float32),
                        pltpu.VMEM((hp, tq, 1), jnp.float32),
                        pltpu.VMEM((hp, tq, d), jnp.float32)],
        compiler_params=pltpu.CompilerParams(
            dimension_semantics=("parallel", "parallel", "parallel", "arbitrary")),
    )(q.astype(jnp.bfloat16), k.astype(jnp.bfloat16), v.astype(jnp.bfloat16))


# ----------------------------------------------------------------------------
# module forward passes (plain-JAX orchestration around the Pallas kernels)
# ----------------------------------------------------------------------------

def transformer_block_forward(p, x, enc, adp):
    B, T, C = x.shape
    nh = max(C // 64, 1)                    # head_dim = 64 convention
    scale = float(C // nh) ** -0.5
    x2 = x.reshape(B * T, C)

    # --- self-attention: Q/K/V and the two KV-copy extraction projections share the same
    #     LayerNorm'd input, so they run as one 5-output fused matmul with the LN applied
    #     on the fly; extracted KV emitted directly in float32.
    mu1, rs1 = layer_norm_stats(x2, eps=1e-5)
    q, ks, vs, k1, v1 = matmul_multi(
        x2,
        [p["attn1"]["wq"], p["attn1"]["wk"], p["attn1"]["wv"], p["kv1_k"], p["kv1_v"]],
        out_dtypes=[jnp.bfloat16, jnp.bfloat16, jnp.bfloat16, jnp.float32, jnp.float32],
        ln=(mu1, rs1, p["ln1_g"], p["ln1_b"]))
    o = multi_head_attention(q.reshape(B, T, C), ks.reshape(B, T, C), vs.reshape(B, T, C),
                             nh, scale)
    o = matmul(o.reshape(B * T, C), p["attn1"]["wo"], p["attn1"]["bo"])
    x2 = x2 + o

    # --- cross-attention (K/V from encoder states); KV extraction from adapter states.
    mu2, rs2 = layer_norm_stats(x2, eps=1e-5)
    Se, Cc = enc.shape[1], enc.shape[2]
    Sa = adp.shape[1]
    q = matmul(x2, p["attn2"]["wq"], ln=(mu2, rs2, p["ln2_g"], p["ln2_b"]))
    kx, vx = matmul_multi(enc.reshape(B * Se, Cc), [p["attn2"]["wk"], p["attn2"]["wv"]],
                          out_dtypes=[jnp.bfloat16, jnp.bfloat16])
    k2, v2 = matmul_multi(adp.reshape(B * Sa, Cc), [p["kv2_k"], p["kv2_v"]],
                          out_dtypes=[jnp.float32, jnp.float32])
    o = multi_head_attention(q.reshape(B, T, C), kx.reshape(B, Se, C), vx.reshape(B, Se, C),
                             nh, scale)
    o = matmul(o.reshape(B * T, C), p["attn2"]["wo"], p["attn2"]["bo"])
    x2 = x2 + o

    # --- feed-forward (GEGLU with LN fused in); dropout(p=0) == identity
    mu3, rs3 = layer_norm_stats(x2, eps=1e-5)
    h = geglu(x2, p["ff_w1"], p["ff_b1"], ln=(mu3, rs3, p["ln3_g"], p["ln3_b"]))
    h = matmul(h, p["ff_w2"], p["ff_b2"])
    x2 = x2 + h

    cache = {"self_attention": {"k": k1.reshape(B, T, C), "v": v1.reshape(B, T, C)},
             "cross_attention": {"k": k2.reshape(B, Sa, C), "v": v2.reshape(B, Sa, C)}}
    return x2.reshape(B, T, C), cache


def transformer2d_forward(p, x, enc, adp, name):
    B, H, W, C = x.shape
    res = x
    h = group_norm(x.reshape(B, H * W, C), p["norm_g"], p["norm_b"],
                   groups=32, eps=1e-6, silu=False)
    h = matmul(h.reshape(B * H * W, C), p["proj_in_w"], p["proj_in_b"]).reshape(B, H * W, C)
    kvs = {}
    for j, bp in enumerate(p["blocks"]):
        h, cache = transformer_block_forward(bp, h, enc, adp)
        kvs[f"{name}.transformer_blocks.{j}"] = cache
    h = matmul(h.reshape(B * H * W, C), p["proj_out_w"], p["proj_out_b"]).reshape(B, H, W, C)
    return h + res, kvs


def resnet_forward(p, x, temb):
    B, H, W, Cin = x.shape
    Cout = p["conv1_w"].shape[-1]
    h = group_norm(x.reshape(B, H * W, Cin), p["norm1_g"], p["norm1_b"],
                   groups=32, eps=1e-5, silu=True).reshape(B, H, W, Cin)
    t = matmul(temb, p["time_w"], p["time_b"], act_in="silu", out_dtype=jnp.float32)
    h = conv3x3(h, p["conv1_w"], p["conv1_b"], per_batch_bias=t)     # conv1 + temb fused
    h = group_norm(h.reshape(B, H * W, Cout), p["norm2_g"], p["norm2_b"],
                   groups=32, eps=1e-5, silu=True).reshape(B, H, W, Cout)
    h = conv3x3(h, p["conv2_w"], p["conv2_b"])
    sc = matmul(x.reshape(B * H * W, Cin), p["short_w"], p["short_b"]).reshape(B, H, W, Cout)
    return sc + h


def upsample_forward(p, x, out_dtype=jnp.float32):
    """Nearest-neighbour 2x upsample + 3x3 conv, fused: each output parity (py, px) equals a
    3x3 conv over the LOW-res image with an 'effective' kernel, so the 4x upsampled
    activation never hits HBM."""
    B, H, W, C = x.shape
    w, b = p["conv_w"], p["conv_b"]
    Cout = w.shape[-1]
    m0 = jnp.array([[1., 0., 0.], [0., 1., 1.], [0., 0., 0.]], jnp.float32)
    m1 = jnp.array([[0., 0., 0.], [1., 1., 0.], [0., 0., 1.]], jnp.float32)
    w_eff = [jnp.einsum("ad,be,deio->abio", my, mx, w)
             for my in (m0, m1) for mx in (m0, m1)]
    w4 = jnp.concatenate(w_eff, axis=-1)                    # (3, 3, C, 4*Cout)
    b4 = jnp.tile(b, 4)
    out = conv3x3(x, w4, b4, out_dtype=out_dtype)           # (B, H, W, 4*Cout)
    out = (out.reshape(B, H, W, 2, 2, Cout).transpose(0, 1, 3, 2, 4, 5)
           .reshape(B, 2 * H, 2 * W, Cout))
    return out


def extract_kv_cross_attn_up_block(params, hidden_states, res_hidden_states_tuple, temb,
                                   encoder_hidden_states, adapter_hidden_states):
    """Inputs/outputs use PyTorch NCHW; internal compute is NHWC / bf16."""
    x = jnp.transpose(hidden_states, (0, 2, 3, 1)).astype(jnp.bfloat16)
    res_list = [jnp.transpose(r, (0, 2, 3, 1)).astype(jnp.bfloat16)
                for r in res_hidden_states_tuple]
    extracted = {}
    for i in range(3):
        res = res_list[-1]
        res_list = res_list[:-1]
        x = jnp.concatenate([x, res], axis=-1)               # channel concat (NHWC last axis)
        x = resnet_forward(params["resnets"][i], x, temb)
        x, kvs = transformer2d_forward(params["attentions"][i], x,
                                       encoder_hidden_states, adapter_hidden_states,
                                       name=f"attentions.{i}")
        extracted.update(kvs)
    x = upsample_forward(params["upsamplers"][0], x, out_dtype=jnp.float32)
    return jnp.transpose(x, (0, 3, 1, 2)), extracted


# ----------------------------------------------------------------------------
# deterministic parameter initialization (synthetic weights)
# ----------------------------------------------------------------------------

def init_params(key, in_channels, out_channels, prev_output_channel, n_layers,
                temb_dim=1280, cross_dim=2048):
    counter = [0]

    def nk():
        counter[0] += 1
        return jax.random.fold_in(key, counter[0])

    def w(shape, scale=0.02):
        return scale * jax.random.normal(nk(), shape, jnp.float32)

    def norm_p(c):
        return (1.0 + 0.05 * jax.random.normal(nk(), (c,), jnp.float32),
                0.02 * jax.random.normal(nk(), (c,), jnp.float32))

    def resnet_p(cin, cout):
        n1g, n1b = norm_p(cin)
        n2g, n2b = norm_p(cout)
        return {"norm1_g": n1g, "norm1_b": n1b,
                "conv1_w": w((3, 3, cin, cout)), "conv1_b": w((cout,)),
                "time_w": w((temb_dim, cout)), "time_b": w((cout,)),
                "norm2_g": n2g, "norm2_b": n2b,
                "conv2_w": w((3, 3, cout, cout)), "conv2_b": w((cout,)),
                "short_w": w((cin, cout)), "short_b": w((cout,))}

    def attn_p(c, cross=None):
        cc = cross if cross is not None else c
        return {"wq": w((c, c)), "wk": w((cc, c)), "wv": w((cc, c)),
                "wo": w((c, c)), "bo": w((c,))}

    def block_p(c):
        l1g, l1b = norm_p(c)
        l2g, l2b = norm_p(c)
        l3g, l3b = norm_p(c)
        return {"ln1_g": l1g, "ln1_b": l1b,
                "attn1": attn_p(c),
                "kv1_k": w((c, c)), "kv1_v": w((c, c)),
                "ln2_g": l2g, "ln2_b": l2b,
                "attn2": attn_p(c, cross_dim),
                "kv2_k": w((cross_dim, c)), "kv2_v": w((cross_dim, c)),
                "ln3_g": l3g, "ln3_b": l3b,
                "ff_w1": w((c, 8 * c)), "ff_b1": w((8 * c,)),   # GEGLU proj: C -> 2*(4C)
                "ff_w2": w((4 * c, c)), "ff_b2": w((c,))}

    def t2d_p(c):
        ng, nb = norm_p(c)
        return {"norm_g": ng, "norm_b": nb,
                "proj_in_w": w((c, c)), "proj_in_b": w((c,)),
                "blocks": [block_p(c) for _ in range(n_layers)],
                "proj_out_w": w((c, c)), "proj_out_b": w((c,))}

    res_in = [prev_output_channel + out_channels,
              2 * out_channels,
              out_channels + in_channels]
    return {"resnets": [resnet_p(ci, out_channels) for ci in res_in],
            "attentions": [t2d_p(out_channels) for _ in range(3)],
            "upsamplers": [{"conv_w": w((3, 3, out_channels, out_channels)),
                            "conv_b": w((out_channels,))}]}


# ----------------------------------------------------------------------------
# demo
# ----------------------------------------------------------------------------

if __name__ == "__main__":
    B, H, W = 2, 8, 8
    in_channels = out_channels = prev_output_channel = 64   # head_dim=64 -> 1 head; GN(32) ok
    n_layers = 1
    S_enc, S_adp = 16, 8
    cross_dim, temb_dim = 2048, 1280

    key = jax.random.PRNGKey(0)
    k = jax.random.split(key, 8)
    # NCHW inputs (PyTorch convention)
    hidden_states = jax.random.normal(k[0], (B, prev_output_channel, H, W), jnp.float32)
    res_hidden_states_tuple = (
        jax.random.normal(k[1], (B, in_channels, H, W), jnp.float32),    # popped last
        jax.random.normal(k[2], (B, out_channels, H, W), jnp.float32),
        jax.random.normal(k[3], (B, out_channels, H, W), jnp.float32),   # popped first
    )
    temb = jax.random.normal(k[4], (B, temb_dim), jnp.float32)
    encoder_hidden_states = jax.random.normal(k[5], (B, S_enc, cross_dim), jnp.float32)
    adapter_hidden_states = jax.random.normal(k[6], (B, S_adp, cross_dim), jnp.float32)

    params = init_params(jax.random.PRNGKey(42), in_channels, out_channels,
                         prev_output_channel, n_layers,
                         temb_dim=temb_dim, cross_dim=cross_dim)

    out, extracted_kvs = extract_kv_cross_attn_up_block(
        params, hidden_states, res_hidden_states_tuple, temb,
        encoder_hidden_states, adapter_hidden_states)

    out = jax.block_until_ready(out)
    extracted_kvs = jax.block_until_ready(extracted_kvs)

    assert out.shape == (B, out_channels, 2 * H, 2 * W), out.shape
    assert bool(jnp.all(jnp.isfinite(out)))
    assert len(extracted_kvs) == 3 * n_layers
    for cache in extracted_kvs.values():
        assert cache["self_attention"]["k"].shape == (B, H * W, out_channels)
        assert cache["self_attention"]["k"].dtype == jnp.float32
        assert cache["cross_attention"]["k"].shape == (B, S_adp, out_channels)

    print("KERNEL_OK")
</pallas_src>

<mosaic_0001>
module attributes {stable_mosaic.version = 11 : i64} {
  func.func @_gn_stats_kernel(%arg0: i32, %arg1: i32, %arg2: memref<1x64x128xbf16, #tpu.memory_space<vmem>>, %arg3: memref<128x32xf32, #tpu.memory_space<vmem>>, %arg4: memref<32x128xf32, #tpu.memory_space<vmem>>, %arg5: memref<1x128xf32, #tpu.memory_space<vmem>>, %arg6: memref<1x128xf32, #tpu.memory_space<vmem>>, %arg7: memref<1x2x128xf32, #tpu.memory_space<vmem>>, %arg8: memref<1x128xf32, #tpu.memory_space<vmem>>, %arg9: memref<1x128xf32, #tpu.memory_space<vmem>>) attributes {dimension_semantics = [#tpu.dimension_semantics<parallel>, #tpu.dimension_semantics<arbitrary>], iteration_bounds = array<i64: 2, 1>, scalar_prefetch = 0 : i64, scratch_operands = 2 : i64, tpu.core_type = #tpu.core_type<tc>, window_params = [{transform_indices = @transform_0, window_bounds = array<i64: 1, 64, 128>}, {pipeline_mode = #tpu.pipeline_mode<synchronous>, transform_indices = @transform_1, window_bounds = array<i64: 128, 32>}, {pipeline_mode = #tpu.pipeline_mode<synchronous>, transform_indices = @transform_2, window_bounds = array<i64: 32, 128>}, {pipeline_mode = #tpu.pipeline_mode<synchronous>, transform_indices = @transform_3, window_bounds = array<i64: 1, 128>}, {pipeline_mode = #tpu.pipeline_mode<synchronous>, transform_indices = @transform_4, window_bounds = array<i64: 1, 128>}, {transform_indices = @transform_5, window_bounds = array<i64: 1, 2, 128>}]} {
    %c0_i32 = arith.constant 0 : i32
    %0 = arith.cmpi eq, %arg1, %c0_i32 : i32
    %1 = arith.extui %0 : i1 to i32
    %c0_i32_0 = arith.constant 0 : i32
    %2 = arith.cmpi ne, %1, %c0_i32_0 : i32
    scf.if %2 {
      %cst_14 = arith.constant 0.000000e+00 : f32
      %20 = vector.broadcast %cst_14 : f32 to vector<1x128xf32>
      %c0_15 = arith.constant 0 : index
      %c0_16 = arith.constant 0 : index
      %21 = vector.load %arg8[%c0_15, %c0_16] : memref<1x128xf32, #tpu.memory_space<vmem>>, vector<1x128xf32>
      tpu.vector_store %arg8[%c0_15, %c0_16], %20 {strides = array<i32>} : memref<1x128xf32, #tpu.memory_space<vmem>>, vector<1x128xf32>,
      %cst_17 = arith.constant 0.000000e+00 : f32
      %22 = vector.broadcast %cst_17 : f32 to vector<1x128xf32>
      %c0_18 = arith.constant 0 : index
      %c0_19 = arith.constant 0 : index
      %23 = vector.load %arg9[%c0_18, %c0_19] : memref<1x128xf32, #tpu.memory_space<vmem>>, vector<1x128xf32>
      tpu.vector_store %arg9[%c0_18, %c0_19], %22 {strides = array<i32>} : memref<1x128xf32, #tpu.memory_space<vmem>>, vector<1x128xf32>,
    } else {
    }
    %c0 = arith.constant 0 : index
    %c0_1 = arith.constant 0 : index
    %c0_2 = arith.constant 0 : index
    %3 = vector.load %arg2[%c0, %c0_1, %c0_2] : memref<1x64x128xbf16, #tpu.memory_space<vmem>>, vector<1x64x128xbf16>
    %4 = vector.shape_cast %3 : vector<1x64x128xbf16> to vector<64x128xbf16>
    %5 = arith.extf %4 : vector<64x128xbf16> to vector<64x128xf32>
    %c0_3 = arith.constant 0 : index
    %c0_4 = arith.constant 0 : index
    %6 = vector.load %arg8[%c0_3, %c0_4] : memref<1x128xf32, #tpu.memory_space<vmem>>, vector<1x128xf32>
    %cst = arith.constant dense<0.000000e+00> : vector<128xf32>
    %7 = vector.multi_reduction <add>, %5, %cst [0] : vector<64x128xf32> to vector<128xf32>
    %8 = vector.shape_cast %7 : vector<128xf32> to vector<1x128xf32>
    %9 = arith.addf %6, %8 : vector<1x128xf32>
    %c0_5 = arith.constant 0 : index
    %c0_6 = arith.constant 0 : index
    %10 = vector.load %arg8[%c0_5, %c0_6] : memref<1x128xf32, #tpu.memory_space<vmem>>, vector<1x128xf32>
    tpu.vector_store %arg8[%c0_5, %c0_6], %9 {strides = array<i32>} : memref<1x128xf32, #tpu.memory_space<vmem>>, vector<1x128xf32>,
    %c0_7 = arith.constant 0 : index
    %c0_8 = arith.constant 0 : index
    %11 = vector.load %arg9[%c0_7, %c0_8] : memref<1x128xf32, #tpu.memory_space<vmem>>, vector<1x128xf32>
    %12 = arith.mulf %5, %5 : vector<64x128xf32>
    %cst_9 = arith.constant dense<0.000000e+00> : vector<128xf32>
    %13 = vector.multi_reduction <add>, %12, %cst_9 [0] : vector<64x128xf32> to vector<128xf32>
    %14 = vector.shape_cast %13 : vector<128xf32> to vector<1x128xf32>
    %15 = arith.addf %11, %14 : vector<1x128xf32>
    %c0_10 = arith.constant 0 : index
    %c0_11 = arith.constant 0 : index
    %16 = vector.load %arg9[%c0_10, %c0_11] : memref<1x128xf32, #tpu.memory_space<vmem>>, vector<1x128xf32>
    tpu.vector_store %arg9[%c0_10, %c0_11], %15 {strides = array<i32>} : memref<1x128xf32, #tpu.memory_space<vmem>>, vector<1x128xf32>,
    %c0_i32_12 = arith.constant 0 : i32
    %17 = arith.cmpi eq, %arg1, %c0_i32_12 : i32
    %18 = arith.extui %17 : i1 to i32
    %c0_i32_13 = arith.constant 0 : i32
    %19 = arith.cmpi ne, %18, %c0_i32_13 : i32
    scf.if %19 {
      %c0_14 = arith.constant 0 : index
      %c0_15 = arith.constant 0 : index
      %20 = vector.load %arg8[%c0_14, %c0_15] : memref<1x128xf32, #tpu.memory_space<vmem>>, vector<1x128xf32>
      %c0_16 = arith.constant 0 : index
      %c0_17 = arith.constant 0 : index
      %21 = vector.load %arg3[%c0_16, %c0_17] : memref<128x32xf32, #tpu.memory_space<vmem>>, vector<128x32xf32>
      %cst_18 = arith.constant dense<0.000000e+00> : vector<1x32xf32>
      %22 = tpu.matmul %20, %21, %cst_18 {dimension_numbers = #tpu.dot_dimension_numbers<[1], [0], [0], [1], [0, 0, 1, 1], [], []>} : vector<1x128xf32>, vector<128x32xf32>, vector<1x32xf32> -> vector<1x32xf32>
      %c0_19 = arith.constant 0 : index
      %c0_20 = arith.constant 0 : index
      %23 = vector.load %arg9[%c0_19, %c0_20] : memref<1x128xf32, #tpu.memory_space<vmem>>, vector<1x128xf32>
      %c0_21 = arith.constant 0 : index
      %c0_22 = arith.constant 0 : index
      %24 = vector.load %arg3[%c0_21, %c0_22] : memref<128x32xf32, #tpu.memory_space<vmem>>, vector<128x32xf32>
      %cst_23 = arith.constant dense<0.000000e+00> : vector<1x32xf32>
      %25 = tpu.matmul %23, %24, %cst_23 {dimension_numbers = #tpu.dot_dimension_numbers<[1], [0], [0], [1], [0, 0, 1, 1], [], []>} : vector<1x128xf32>, vector<128x32xf32>, vector<1x32xf32> -> vector<1x32xf32>
      %cst_24 = arith.constant 3.906250e-03 : f32
      %26 = vector.broadcast %cst_24 : f32 to vector<1x32xf32>
      %27 = arith.mulf %22, %26 : vector<1x32xf32>
      %cst_25 = arith.constant 3.906250e-03 : f32
      %28 = vector.broadcast %cst_25 : f32 to vector<1x32xf32>
      %29 = arith.mulf %25, %28 : vector<1x32xf32>
      %30 = arith.mulf %27, %27 : vector<1x32xf32>
      %31 = arith.subf %29, %30 : vector<1x32xf32>
      %cst_26 = arith.constant 0.000000e+00 : f32
      %32 = vector.broadcast %cst_26 : f32 to vector<1x32xf32>
      %33 = arith.maximumf %31, %32 : vector<1x32xf32>
      %cst_27 = arith.constant 9.99999974E-6 : f32
      %34 = vector.broadcast %cst_27 : f32 to vector<1x32xf32>
      %35 = arith.addf %33, %34 : vector<1x32xf32>
      %36 = math.rsqrt %35 : vector<1x32xf32>
      %c0_28 = arith.constant 0 : index
      %c0_29 = arith.constant 0 : index
      %37 = vector.load %arg4[%c0_28, %c0_29] : memref<32x128xf32, #tpu.memory_space<vmem>>, vector<32x128xf32>
      %cst_30 = arith.constant dense<0.000000e+00> : vector<1x128xf32>
      %38 = tpu.matmul %27, %37, %cst_30 {dimension_numbers = #tpu.dot_dimension_numbers<[1], [0], [0], [1], [0, 0, 1, 1], [], []>} : vector<1x32xf32>, vector<32x128xf32>, vector<1x128xf32> -> vector<1x128xf32>
      %c0_31 = arith.constant 0 : index
      %c0_32 = arith.constant 0 : index
      %39 = vector.load %arg4[%c0_31, %c0_32] : memref<32x128xf32, #tpu.memory_space<vmem>>, vector<32x128xf32>
      %cst_33 = arith.constant dense<0.000000e+00> : vector<1x128xf32>
      %40 = tpu.matmul %36, %39, %cst_33 {dimension_numbers = #tpu.dot_dimension_numbers<[1], [0], [0], [1], [0, 0, 1, 1], [], []>} : vector<1x32xf32>, vector<32x128xf32>, vector<1x128xf32> -> vector<1x128xf32>
      %c0_34 = arith.constant 0 : index
      %c0_35 = arith.constant 0 : index
      %41 = vector.load %arg5[%c0_34, %c0_35] : memref<1x128xf32, #tpu.memory_space<vmem>>, vector<1x128xf32>
      %42 = arith.mulf %41, %40 : vector<1x128xf32>
      %c0_36 = arith.constant 0 : index
      %c0_37 = arith.constant 0 : index
      %43 = vector.load %arg6[%c0_36, %c0_37] : memref<1x128xf32, #tpu.memory_space<vmem>>, vector<1x128xf32>
      %44 = arith.mulf %38, %42 : vector<1x128xf32>
      %45 = arith.subf %43, %44 : vector<1x128xf32>
      %46 = tpu.concatenate %42, %45 in 0 : vector<1x128xf32>, vector<1x128xf32> -> vector<2x128xf32>
      %c0_38 = arith.constant 0 : index
      %c0_39 = arith.constant 0 : index
      %c0_40 = arith.constant 0 : index
      %47 = vector.load %arg7[%c0_38, %c0_39, %c0_40] : memref<1x2x128xf32, #tpu.memory_space<vmem>>, vector<1x2x128xf32>
      %48 = vector.shape_cast %47 : vector<1x2x128xf32> to vector<2x128xf32>
      %49 = vector.shape_cast %46 : vector<2x128xf32> to vector<1x2x128xf32>
      tpu.vector_store %arg7[%c0_38, %c0_39, %c0_40], %49 {strides = array<i32>} : memref<1x2x128xf32, #tpu.memory_space<vmem>>, vector<1x2x128xf32>,
    } else {
    }
    return
  }
  func.func @transform_0(%arg0: i32, %arg1: i32) -> (i32, i32, i32) {
    %c0_i32 = arith.constant 0 : i32
    %c0_i32_0 = arith.constant 0 : i32
    return %arg0, %arg1, %c0_i32 : i32, i32, i32
  }
  func.func @transform_1(%arg0: i32, %arg1: i32) -> (i32, i32) {
    %c0_i32 = arith.constant 0 : i32
    %c0_i32_0 = arith.constant 0 : i32
    %c0_i32_1 = arith.constant 0 : i32
    return %c0_i32, %c0_i32_0 : i32, i32
  }
  func.func @transform_2(%arg0: i32, %arg1: i32) -> (i32, i32) {
    %c0_i32 = arith.constant 0 : i32
    %c0_i32_0 = arith.constant 0 : i32
    %c0_i32_1 = arith.constant 0 : i32
    return %c0_i32, %c0_i32_0 : i32, i32
  }
  func.func @transform_3(%arg0: i32, %arg1: i32) -> (i32, i32) {
    %c0_i32 = arith.constant 0 : i32
    %c0_i32_0 = arith.constant 0 : i32
    %c0_i32_1 = arith.constant 0 : i32
    return %c0_i32, %c0_i32_0 : i32, i32
  }
  func.func @transform_4(%arg0: i32, %arg1: i32) -> (i32, i32) {
    %c0_i32 = arith.constant 0 : i32
    %c0_i32_0 = arith.constant 0 : i32
    %c0_i32_1 = arith.constant 0 : i32
    return %c0_i32, %c0_i32_0 : i32, i32
  }
  func.func @transform_5(%arg0: i32, %arg1: i32) -> (i32, i32, i32) {
    %c0_i32 = arith.constant 0 : i32
    %c0_i32_0 = arith.constant 0 : i32
    %c0_i32_1 = arith.constant 0 : i32
    return %arg0, %c0_i32, %c0_i32_0 : i32, i32, i32
  }
}

</mosaic_0001>

<bundles_post_ra>
// kernel: tpu_custom_call.1
= control target key start
LH: loop header
LB: loop body
LE: loop exit
PB: predicated region body
PF: predicated region fallthrough
CT: control target
= control target key end

     0   :  { %10 = vsyncpa [#allocation5], 0  ;;  %s909_s0 = inlined_call_operand.vmem [shape: bf16[2,64,128], index: 0, kind: input, shape index: {}]   ;;  %s910_s1 = inlined_call_operand.vmem [shape: f32[128,32], index: 1, kind: input, shape index: {}]   ;;  %s911_s2 = inlined_call_operand.vmem [shape: f32[32,128], index: 2, kind: input, shape index: {}]   ;;  %s912_s3 = inlined_call_operand.vmem [shape: f32[1,128], index: 3, kind: input, shape index: {}]   ;;  %s913_s4 = inlined_call_operand.vmem [shape: f32[1,128], index: 4, kind: input, shape index: {}]   ;;  %s914_s5 = inlined_call_operand.hbm [shape: f32[2,2,128], index: 5, kind: output, shape index: {}]  }
   0x1   :  { %12 = vsyncpa [#allocation5 + $0x1], 0  ;;  %s744_s18 = smov 0   ;;  %s746_s19 = smov 0  }
   0x2   :  { %s748_s20 = smov 0   ;;  %s750_s21 = smov 0  }
   0x3   :  { %s752_s22 = smov 0   ;;  %s754_s23 = smov 0  }
   0x4 LB: > { %s541_s24 = sadd.s32 4294967295, %s711_s23   ;;  %s542_s25 = sadd.s32 4294967294, %s711_s23   ;;  %s711_s23 = sphi %s754_s23, %s18_s23   ;;  %s707_s22 = sphi %s752_s22, %s921_s22   ;;  %s703_s21 = sphi %s750_s21, %s920_s21   ;;  %s699_s20 = sphi %s748_s20, %s919_s20   ;;  %s695_s19 = sphi %s746_s19, %s918_s19   ;;  %s691_s18 = sphi %s744_s18, %s917_s18  }
   0x5   : > { %s30_s26 = sadd.s32 1, %s707_s22  ;;  %s149_s27 = sadd.s32 1, %s699_s20 }
   0x6   : > { %p32_p0 = scmp.ge.s32.totalorder %s30_s26, 2  ;;  %p159_p1 = scmp.ne.s32.totalorder %s699_s20, %s695_s19 }
   0x7   : > { %p160_p2 = scmp.eq.s32.totalorder %s541_s24, 1  ;;  %p165_p3 = scmp.ne.s32.totalorder %s695_s19, %s691_s18 }
   0x8   : > { %s923_s26 = smov (%p32_p0, %s30_s26), 0  ;;  %p166_p5 = scmp.eq.s32.totalorder %s542_s25, 1 }
   0x9   : > { %p784_p4 = por %p160_p2, %p159_p1  ;;  %s146_s29 = ssub.s32 %s707_s22, %s923_s26 }
   0xa   : > { %p545_p6 = scmp.ge.s32.totalorder %s711_s23, 1  ;;  %p147_p7 = scmp.eq.s32.totalorder %s146_s29, 0 }
   0xb   : > { %p791_p8 = por %p166_p5, %p165_p3  ;;  %p209_p9 = scmp.lt.s32.totalorder %s711_s23, 3 }
   0xc   : > { %s797_s6 = scalar_select %p147_p7, %s699_s20, %s149_s27  }
   0xd   : > { %p210_p10 = pnand %p545_p6, %p209_p9 }
   0xe   : > { %p242_p11 = scmp.lt.s32.totalorder (!%p210_p10), %s703_s21, 1  ;;  %s238_s7 = sand.u32 (!%p210_p10), 1, %s695_s19  }
   0xf   : > { %213 = sbr.rel (%p210_p10) target bundleno = 361 (0x169), region = 40  ;;  %s546_s10 = sshll.u32 (!%p210_p10), %s238_s7, 1 }
  0x10   : > { %s552_s11 = sshll.u32 (!%p210_p10), %s703_s21, 1  ;;  %s240_s17 = scalar_lea.vmem (!%p210_p10), [#allocation4], %s546_s10 }
  0x11   : > { %s465_s24 = sshll.u32 (!%p210_p10), %s240_s17, 4  ;;  %s653_s10 = scalar_lea.hbm (!%p210_p10), %s914_s5, 4  ;;  %s466_s24 = int_to_ptr.vmem [resolvable:$true] %s465_s24 }
  0x14   : > { %v332_v0 = vld [vmem:[%s910_s1 + $0x78] sm:$0xff]  ;;  %v331_v1 = vld [vmem:[%s910_s1 + $0x70] sm:$0xff]  ;;  %v713_v2 = vmov 0.0   ;;  %v330_v3 = vld [vmem:[%s910_s1 + $0x68] sm:$0xff]  ;;  %s243_s13 = scalar_select %p242_p11, %s703_s21, 1  ;;  %vm394_vm0 = vcmask 261120  }
  0x15   : > { %333 = vmatpush.msra.mxu0 %v332_v0  ;;  %354 = vmatpush.msra.mxu1 %v332_v0  ;;  %255 = vst [vmem:[#allocation2] sm:$0x1] %v713_v2  ;;  %v329_v4 = vld [vmem:[%s910_s1 + $0x60] sm:$0xff]  ;;  %v328_v5 = vld [vmem:[%s910_s1 + $0x58] sm:$0xff]  ;;  %v327_v12 = vld [vmem:[%s910_s1 + $0x50] sm:$0xff]  ;;  %vm449_vm4 = vcmask 1040384  }
  0x16   : > { %256 = vst [vmem:[#allocation3] sm:$0x1] %v713_v2  ;;  %s555_s16 = sshll.u32 %s243_s13, 5  ;;  %v326_v17 = vld [vmem:[%s910_s1 + $0x48] sm:$0xff]  ;;  %v325_v22 = vld [vmem:[%s910_s1 + $0x40] sm:$0xff]  ;;  %v324_v27 = vld [vmem:[%s910_s1 + $0x38] sm:$0xff] }
  0x17   : > { %334 = vmatpush.msra.mxu0 %v331_v1  ;;  %355 = vmatpush.msra.mxu1 %v331_v1  ;;  %s249_s25 = scalar_lea.vmem %s909_s0, %s555_s16  ;;  %v323_v32 = vld [vmem:[%s910_s1 + $0x30] sm:$0xff]  ;;  %v393_v36 = vld [vmem:[%s911_s2 + $0x18] sm:$0xff]  ;;  %v322_v39 = vld [vmem:[%s910_s1 + $0x28] sm:$0xff]  ;;  %s463_s16 = scalar_lea.hbm %s914_s5, %s552_s11 }
  0x18   : > { %v557_v6 = vld [vmem:[%s249_s25] sm:$0xff]   ;;  %v572_v7 = vld [vmem:[%s249_s25 + $0x8] sm:$0xff]   ;;  %v573_v11 = vld [vmem:[%s249_s25 + $0x10] sm:$0xff]   ;;  %410 = vmatpush.msra.mxu2 %v393_v36  ;;  %433 = vmatpush.msra.mxu3 %v393_v36  ;;  %s453_s21 = scalar_lea.sflag [#allocation5], %s238_s7 }
  0x19   : > { %335 = vmatpush.msra.mxu0 %v330_v3  ;;  %356 = vmatpush.msra.mxu1 %v330_v3  ;;  %v558_v8 = vunpack.c.l.bf16 %v557_v6  ;;  %v559_v9 = vunpack.c.h.bf16 %v557_v6  ;;  %v562_v10 = vunpack.c.l.bf16 %v572_v7  ;;  %v563_v13 = vunpack.c.h.bf16 %v572_v7  ;;  %v574_v20 = vld [vmem:[%s249_s25 + $0x18] sm:$0xff]   ;;  %v392_v38 = vld [vmem:[%s911_s2 + $0x10] sm:$0xff]  ;;  %v321_v43 = vld [vmem:[%s910_s1 + $0x20] sm:$0xff]  ;;  %s467_s25 = sshll.u32 %s463_s16, 4  ;;  %s468_s25 = int_to_ptr.hbm [resolvable:$true] %s467_s25 }
  0x1a   : > { %v566_v18 = vunpack.c.l.bf16 %v573_v11  ;;  %v567_v23 = vunpack.c.h.bf16 %v573_v11  ;;  %v570_v28 = vunpack.c.l.bf16 %v574_v20  ;;  %v571_v33 = vunpack.c.h.bf16 %v574_v20  ;;  %411 = vmatpush.msra.mxu2 %v392_v38  ;;  %434 = vmatpush.msra.mxu3 %v392_v38  ;;  %v320_v47 = vld [vmem:[%s910_s1 + $0x18] sm:$0xff]  ;;  %v319_v50 = vld [vmem:[%s910_s1 + $0x10] sm:$0xff]  ;;  %v318_v53 = vld [vmem:[%s910_s1 + $0x8] sm:$0xff]  ;;  %s647_s27 = sshra.s32 %s468_s25, 4  ;;  %s648_s27 = int_to_ptr.hbm [resolvable:$true] %s647_s27 }
  0x1b   : > { %336 = vmatpush.msra.mxu0 %v329_v4  ;;  %357 = vmatpush.msra.mxu1 %v329_v4  ;;  %v274_v14 = vadd.f32 %v559_v9, %v558_v8  ;;  %v290_v15 = vmul.f32 %v558_v8, %v558_v8  ;;  %v291_v16 = vmul.f32 %v559_v9, %v559_v9  ;;  %v317_v56 = vld [vmem:[%s910_s1] sm:$0xff]  ;;  %v391_v7 = vld [vmem:[%s911_s2 + $0x8] sm:$0xff]  ;;  %s649_s29 = scalar_lea.hbm %s648_s27, 2  ;;  %p654_p1 = scmp.lt.s32.totalorder %s648_s27, %s914_s5 }
  0x1c   : > { %v292_v19 = vmul.f32 %v562_v10, %v562_v10  ;;  %v293_v24 = vmul.f32 %v563_v13, %v563_v13  ;;  %v294_v29 = vmul.f32 %v566_v18, %v566_v18  ;;  %v295_v34 = vmul.f32 %v567_v23, %v567_v23  ;;  %v273_v61 = vld [vmem:[#allocation2] sm:$0x1]  ;;  %412 = vmatpush.msra.mxu2 %v391_v7  ;;  %p650_p12 = scmp.ne.s32.totalorder %s648_s27, %s649_s29  ;;  %p655_p2 = scmp.lt.s32.totalorder %s653_s10, %s649_s29 }
  0x1d   : > { %337 = vmatpush.msra.mxu0 %v328_v5  ;;  %358 = vmatpush.msra.mxu1 %v328_v5  ;;  %v275_v21 = vadd.f32 %v562_v10, %v274_v14  ;;  %v298_v25 = vadd.f32 %v291_v16, %v290_v15  ;;  %v296_v40 = vmul.f32 %v570_v28, %v570_v28  ;;  %v289_v2 = vld [vmem:[#allocation3] sm:$0x1] }
  0x1e   : > { %v297_v44 = vmul.f32 %v571_v33, %v571_v33  ;;  %435 = vmatpush.msra.mxu3 %v391_v7  ;;  %v390_v8 = vld [vmem:[%s911_s2] sm:$0xff]  ;;  %p651_p13 = pnand %p650_p12, %p784_p4  ;;  %p656_p3 = por %p655_p2, %p654_p1 }
  0x1f   : > { %338 = vmatpush.msra.mxu0 %v327_v12  ;;  %359 = vmatpush.msra.mxu1 %v327_v12  ;;  %v276_v26 = vadd.f32 %v563_v13, %v275_v21  ;;  %v299_v30 = vadd.f32 %v298_v25, %v292_v19 }
  0x20   : > { %413 = vmatpush.msra.mxu2 %v390_v8  ;;  %436 = vmatpush.msra.mxu3 %v390_v8  ;;  %p652_p0 = pneg %p651_p13 }
  0x21   : > { %339 = vmatpush.msra.mxu0 %v326_v17  ;;  %360 = vmatpush.msra.mxu1 %v326_v17  ;;  %v277_v31 = vadd.f32 %v566_v18, %v276_v26  ;;  %v300_v35 = vadd.f32 %v299_v30, %v293_v24  ;;  %v441_v24 = vld [vmem:[%s912_s3] sm:$0x1] }
  0x22   : > { %p657_p5 = pnand %p656_p3, %p652_p0 }
  0x23   : > { %340 = vmatpush.msra.mxu0 %v325_v22  ;;  %361 = vmatpush.msra.mxu1 %v325_v22  ;;  %v278_v37 = vadd.f32 %v567_v23, %v277_v31  ;;  %v301_v41 = vadd.f32 %v300_v35, %v294_v29 }
  0x25   : > { %341 = vmatpush.msra.mxu0 %v324_v27  ;;  %362 = vmatpush.msra.mxu1 %v324_v27  ;;  %v279_v42 = vadd.f32 %v570_v28, %v278_v37  ;;  %v302_v45 = vadd.f32 %v301_v41, %v295_v34  ;;  %v443_v28 = vld [vmem:[%s913_s4] sm:$0x1] }
  0x27   : > { %342 = vmatpush.msra.mxu0 %v323_v32  ;;  %363 = vmatpush.msra.mxu1 %v323_v32  ;;  %v280_v46 = vadd.f32 %v571_v33, %v279_v42  ;;  %v303_v48 = vadd.f32 %v302_v45, %v296_v40 }
  0x29   : > { %343 = vmatpush.msra.mxu0 %v322_v39  ;;  %364 = vmatpush.msra.mxu1 %v322_v39  ;;  %v281_v49 = vrot.slane %v280_v46, 4  ;;  %v304_v51 = vadd.f32 %v303_v48, %v297_v44 }
  0x2b   : > { %344 = vmatpush.msra.mxu0 %v321_v43  ;;  %365 = vmatpush.msra.mxu1 %v321_v43  ;;  %v282_v52 = vadd.f32 %v281_v49, %v280_v46  ;;  %v305_v54 = vrot.slane %v304_v51, 4 }
  0x2d   : > { %345 = vmatpush.msra.mxu0 %v320_v47  ;;  %366 = vmatpush.msra.mxu1 %v320_v47  ;;  %v283_v55 = vrot.slane %v282_v52, 2  ;;  %v306_v57 = vadd.f32 %v305_v54, %v304_v51 }
  0x2f   : > { %346 = vmatpush.msra.mxu0 %v319_v50  ;;  %367 = vmatpush.msra.mxu1 %v319_v50  ;;  %v284_v58 = vadd.f32 %v283_v55, %v282_v52  ;;  %v307_v59 = vrot.slane %v306_v57, 2 }
  0x31   : > { %347 = vmatpush.msra.mxu0 %v318_v53  ;;  %368 = vmatpush.msra.mxu1 %v318_v53  ;;  %v285_v60 = vrot.slane %v284_v58, 1  ;;  %v308_v62 = vadd.f32 %v307_v59, %v306_v57 }
  0x33   : > { %348 = vmatpush.msra.mxu0 %v317_v56  ;;  %369 = vmatpush.msra.mxu1 %v317_v56  ;;  %v286_v63 = vadd.f32 %v285_v60, %v284_v58  ;;  %v309_v0 = vrot.slane %v308_v62, 1 }
  0x35   : > { %v287_v1 = vadd.f32 %v286_v63, %v273_v61  ;;  %v310_v3 = vadd.f32 %v309_v0, %v308_v62 }
  0x37   : > { %288 = vst [vmem:[#allocation2] sm:$0x1] %v287_v1  ;;  %v311_v4 = vadd.f32 %v310_v3, %v289_v2 }
  0x39   : > { %312 = vst [vmem:[#allocation3] sm:$0x1] %v311_v4 }
  0x3e   : > { %v316_v5 = vld [vmem:[#allocation2] sm:$0x1] }
  0x3f   : > { %349 = vmatmul.f32.vlgmr.msra.gmra.mxu0 %v316_v5 }
  0x40   : > { %v353_v6 = vld [vmem:[#allocation3] sm:$0x1] }
  0x41   : > { %370 = vmatmul.f32.vlgmr.msra.gmra.mxu1 %v353_v6 }
  0xbc   : > { %v350_v9 = vpop.f32.mrf.mxu0 }
  0xbd   : > { %v374_v10 = vmul.f32 0.00390625, %v350_v9 }
  0xbe   : > { %v371_v12 = vpop.f32.mrf.mxu1 }
  0xbf   : > { %v376_v11 = vmul.f32 %v374_v10, %v374_v10  ;;  %549 = vmatmul.msk.f32.vlgmr.msra.gmra.mxu2 %vm394_vm0, %v374_v10  ;;  %v375_v13 = vmul.f32 0.00390625, %v371_v12 }
  0xc1   : > { %v377_v14 = vsub.f32 %v375_v13, %v376_v11 }
  0xc3   : > { %v378_v15 = vmax.f32 %v377_v14, 0.0 }
  0xc5   : > { %v379_v16 = vadd.f32 1e-05, %v378_v15 }
  0xc7   : > { %631 = vrsqrt.f32 %v379_v16  ;;  %vm386_vm2 = vweird.f32 %v379_v16 }
  0xcd   : > { %v632_v17 = vpop.eup %631 }
  0xce   : > { %v381_v18 = vmul.f32 %v632_v17, %v379_v16  ;;  %vm387_vm1 = vweird.f32 %v632_v17 }
  0xcf   : > { %vm388_vm3 = vmor %vm386_vm2, %vm387_vm1 }
  0xd0   : > { %v382_v19 = vmul.f32 %v632_v17, %v381_v18 }
  0xd2   : > { %v383_v20 = vmul.f32 0.5, %v382_v19 }
  0xd4   : > { %v384_v21 = vsub.f32 1.5, %v383_v20 }
  0xd6   : > { %v385_v22 = vmul.f32 %v632_v17, %v384_v21 }
  0xd8   : > { %v389_v23 = vsel %vm388_vm3, %v632_v17, %v385_v22 }
  0xd9   : > { %550 = vmatmul.msk.f32.vlgmr.msra.gmra.mxu3 %vm394_vm0, %v389_v23 }
 0x142   : > { %v415_v27 = vpop.f32.mrf.mxu2 }
 0x15c   : > { %v438_v25 = vpop.f32.mrf.mxu3 }
 0x15d   : > { %v442_v26 = vmul.f32 %v441_v24, %v438_v25 }
 0x15f   : > { %v444_v29 = vmul.f32 %v442_v26, %v415_v27 }
 0x161   : > { %v445_v30 = vsub.f32 %v443_v28, %v444_v29 }
 0x163   : > { %v447_v31 = vperm.slane %v445_v30, 0 }
 0x165   : > { %v450_v32 = vsel %vm449_vm4, %v442_v26, %v447_v31 }
 0x166   : > { %451 = vst [vmem:[%s240_s17] sm:$0x3] %v450_v32 }
 0x167   : > { %660 = shalt.err (!%p657_p5)
}
 0x168   : > { %575 = dma.vmem_to_hbm [thread:$0]  (%p784_p4), %s466_s24, 32, %s468_s25, %s453_s21  }
 0x169 PF: > { %p581_p6 = scmp.ge.s32.totalorder %s711_s23, 2  ;;  %s479_s7 = sand.u32 1, %s691_s18  }
 0x16a   : > { %s480_s13 = scalar_lea.sflag [#allocation5], %s479_s7 }
 0x16b   : > { %p578_p7 = pnand %p581_p6, %p791_p8 }
 0x16d   : > { %p579_p9 = pneg %p578_p7 }
 0x16f   : > { %686 = dma.done.wait (%p579_p9), %s480_s13, 32  }
 0x170   : > { %688 = vsyncadd (%p579_p9), %s480_s13, 4294967264  ;;  %s18_s23 = sadd.s32 1, %s711_s23   ;;  %s917_s18 = smov %s695_s19 }
 0x171   : > { %p15_p10 = scmp.ge.s32.totalorder %s18_s23, 4   ;;  %s918_s19 = smov %s699_s20 }
 0x172   : > { %s919_s20 = smov %s797_s6  ;;  %s920_s21 = smov %s707_s22 }
 0x173   : > { %s921_s22 = smov %s923_s26  ;;  %17 = sbr.rel (!%p15_p10) target bundleno = 4 (0x4), region = 83 }
 0x178   :  { %486 = vsyncpa [#allocation5], 1 }
 0x179   :  { %488 = vsyncpa [#allocation5 + $0x1], 1 }

</bundles_post_ra>
